<compile_context>
chip_gen: v7x
topology: tpu7x:2x2x1
jax: 0.10.0
libtpu: 0.0.40
codegen_flags: <defaults>
</compile_context>

<pallas_src>
import jax
import jax.numpy as jnp
from jax.experimental import pallas as pl
from jax.experimental.pallas import tpu as pltpu

_LANES = 128


def _cdiv(a, b):
    return -(-a // b)


def _round_up(a, b):
    return _cdiv(a, b) * b


def _make_miou_kernel(n_classes):
    C = n_classes

    def kernel(x_ref, t_ref, out_ref):
        # x_ref:   (C, TR, 128) float32 logits tile
        # t_ref:   (TR, 128)    int32 labels tile (-1 marks padded pixels)
        # out_ref: (2*C, 128)   float32 accumulator (resident across HW tiles):
        #          rows [0, C)    -> per-class intersection partial sums
        #          rows [C, 2*C)  -> per-class union partial sums
        j = pl.program_id(2)

        @pl.when(j == 0)
        def _init():
            out_ref[...] = jnp.zeros_like(out_ref)

        t = t_ref[...]
        valid = (t >= 0).astype(jnp.float32)

        xs = [x_ref[c] for c in range(C)]

        # numerically stable softmax over classes, as C-way elementwise ops
        m = xs[0]
        for c in range(1, C):
            m = jnp.maximum(m, xs[c])
        es = [jnp.exp(xs[c] - m) for c in range(C)]
        denom = es[0]
        for c in range(1, C):
            denom = denom + es[c]
        # one reciprocal instead of C divides; fold the padding mask in here
        inv = pl.reciprocal(denom, approx=False) * valid

        for c in range(C):
            p_c = es[c] * inv                              # masked probability
            oh_c = (t == c).astype(jnp.float32)            # per-class compare
            prod = p_c * oh_c
            inter_p = jnp.sum(prod, axis=0, keepdims=True)  # (1, 128)
            sum_p = jnp.sum(p_c, axis=0, keepdims=True)
            cnt_p = jnp.sum(oh_c, axis=0, keepdims=True)
            out_ref[pl.ds(c, 1), :] += inter_p
            out_ref[pl.ds(C + c, 1), :] += sum_p + cnt_p - inter_p

    return kernel


def mm_iou_loss(inputs, target, n_classes=2, *, tile_rows=None, num_parts=None):
    """inputs: (N, C, H, W) float logits; target: (N, H, W) integer labels."""
    N, C, H, W = inputs.shape
    assert C == n_classes
    HW = H * W

    r_total = _cdiv(HW, _LANES)            # number of 128-lane pixel rows

    if num_parts is None:
        # Keep both v7x TensorCores busy when the batch axis cannot.
        num_parts = 2 if N == 1 else 1

    if tile_rows is None:
        # ~2 MiB per (C, TR, 128) f32 logits block keeps double-buffered inputs
        # well under v5e's 16 MiB scoped-VMEM default and v7x's 64 MiB VMEM.
        budget_rows = max(8, ((2 * 1024 * 1024) // (C * _LANES * 4)) // 8 * 8)
        need_rows = _round_up(_cdiv(r_total, num_parts), 8)
        tile_rows = max(8, min(budget_rows, need_rows))
    TR = tile_rows

    tiles = _cdiv(r_total, TR)
    tiles_per_part = _cdiv(tiles, num_parts)
    r_pad = num_parts * tiles_per_part * TR
    hw_pad = r_pad * _LANES

    x = inputs.reshape(N, C, HW).astype(jnp.float32)
    t = target.reshape(N, HW).astype(jnp.int32)
    if hw_pad != HW:
        x = jnp.pad(x, ((0, 0), (0, 0), (0, hw_pad - HW)))
        # sentinel -1: never equals a class id and flags the pixel as invalid
        t = jnp.pad(t, ((0, 0), (0, hw_pad - HW)), constant_values=-1)
    x = x.reshape(N, C, r_pad, _LANES)
    t = t.reshape(N, r_pad, _LANES)
    # TODO(synk): cast labels to int8 and logits to bf16 in HBM to cut DMA bytes
    # further once the (32,128)/(16,128) packed block layouts are validated.

    T = tiles_per_part
    kernel = _make_miou_kernel(C)

    cost = pl.CostEstimate(
        flops=10 * N * C * hw_pad,
        transcendentals=N * C * hw_pad,
        bytes_accessed=N * hw_pad * (C + 1) * 4
        + N * num_parts * 2 * C * _LANES * 4,
    )

    out = pl.pallas_call(
        kernel,
        out_shape=jax.ShapeDtypeStruct((N, num_parts, 2 * C, _LANES),
                                       jnp.float32),
        grid_spec=pltpu.PrefetchScalarGridSpec(
            num_scalar_prefetch=0,
            grid=(N, num_parts, T),
            in_specs=[
                pl.BlockSpec((None, C, TR, _LANES),
                             lambda n, p, j: (n, 0, p * T + j, 0)),
                pl.BlockSpec((None, TR, _LANES),
                             lambda n, p, j: (n, p * T + j, 0)),
            ],
            out_specs=pl.BlockSpec((None, None, 2 * C, _LANES),
                                   lambda n, p, j: (n, p, 0, 0)),
        ),
        compiler_params=pltpu.CompilerParams(
            dimension_semantics=("parallel", "parallel", "arbitrary")),
        cost_estimate=cost,
    )(x, t)

    sums = out.sum(axis=(1, 3))            # (N, 2*C): fold parts and lanes
    inter = sums[:, :C]
    union = sums[:, C:]
    iou = inter / (union + 1e-8)
    return -jnp.min(iou) - jnp.mean(iou)


def _mm_iou_loss_ref(inputs, target, n_classes=2):
    """Pure-JAX reference mirroring the PyTorch module."""
    N, C, H, W = inputs.shape
    p = jax.nn.softmax(inputs.astype(jnp.float32), axis=1)
    oh = jax.nn.one_hot(target.astype(jnp.int32), n_classes, axis=1,
                        dtype=jnp.float32)                 # (N, C, H, W)
    inter = (p * oh).reshape(N, C, -1).sum(-1)
    union = (p + oh - p * oh).reshape(N, C, -1).sum(-1)
    iou = inter / (union + 1e-8)
    return -jnp.min(iou) - jnp.mean(iou)


if __name__ == "__main__":
    key = jax.random.PRNGKey(0)
    k1, k2, k3, k4 = jax.random.split(key, 4)

    # Case 1: module default n_classes=2, HW a multiple of 128 (still padded
    # up to the minimum 8x128 tile; exercises the masking path).
    N, C, H, W = 2, 2, 16, 16
    inputs = jax.random.normal(k1, (N, C, H, W), dtype=jnp.float32)
    target = jax.random.randint(k2, (N, H, W), 0, C, dtype=jnp.int32)
    loss = jax.block_until_ready(mm_iou_loss(inputs, target, n_classes=C))
    loss_ref = jax.block_until_ready(_mm_iou_loss_ref(inputs, target, n_classes=C))
    assert jnp.allclose(loss, loss_ref, atol=1e-5, rtol=1e-5), (loss, loss_ref)

    # Case 2: N == 1 (exercises the 2-part parallel split for v7x) with a
    # ragged spatial size (HW not a multiple of 128) and more classes.
    N2, C2, H2, W2 = 1, 4, 9, 13
    inputs2 = jax.random.normal(k3, (N2, C2, H2, W2), dtype=jnp.float32)
    target2 = jax.random.randint(k4, (N2, H2, W2), 0, C2, dtype=jnp.int32)
    loss2 = jax.block_until_ready(mm_iou_loss(inputs2, target2, n_classes=C2))
    loss2_ref = jax.block_until_ready(_mm_iou_loss_ref(inputs2, target2, n_classes=C2))
    assert jnp.allclose(loss2, loss2_ref, atol=1e-5, rtol=1e-5), (loss2, loss2_ref)

    print("KERNEL_OK")
</pallas_src>

<mosaic_0001>
module attributes {stable_mosaic.version = 11 : i64} {
  func.func @kernel(%arg0: i32, %arg1: i32, %arg2: i32, %arg3: memref<1x2x8x128xf32, #tpu.memory_space<vmem>>, %arg4: memref<1x8x128xi32, #tpu.memory_space<vmem>>, %arg5: memref<1x1x4x128xf32, #tpu.memory_space<vmem>>) attributes {dimension_semantics = [#tpu.dimension_semantics<parallel>, #tpu.dimension_semantics<parallel>, #tpu.dimension_semantics<arbitrary>], iteration_bounds = array<i64: 2, 1, 1>, scalar_prefetch = 0 : i64, scratch_operands = 0 : i64, tpu.core_type = #tpu.core_type<tc>, window_params = [{transform_indices = @transform_0, window_bounds = array<i64: 1, 2, 8, 128>}, {transform_indices = @transform_1, window_bounds = array<i64: 1, 8, 128>}, {transform_indices = @transform_2, window_bounds = array<i64: 1, 1, 4, 128>}]} {
    %c0_i32 = arith.constant 0 : i32
    %0 = arith.cmpi eq, %arg2, %c0_i32 : i32
    %1 = arith.extui %0 : i1 to i32
    %c0_i32_0 = arith.constant 0 : i32
    %2 = arith.cmpi ne, %1, %c0_i32_0 : i32
    scf.if %2 {
      %cst_47 = arith.constant 0.000000e+00 : f32
      %73 = vector.broadcast %cst_47 : f32 to vector<4x128xf32>
      %c0_48 = arith.constant 0 : index
      %c0_49 = arith.constant 0 : index
      %c0_50 = arith.constant 0 : index
      %c0_51 = arith.constant 0 : index
      %74 = vector.load %arg5[%c0_48, %c0_49, %c0_50, %c0_51] : memref<1x1x4x128xf32, #tpu.memory_space<vmem>>, vector<1x1x4x128xf32>
      %75 = vector.shape_cast %74 : vector<1x1x4x128xf32> to vector<4x128xf32>
      %76 = vector.shape_cast %73 : vector<4x128xf32> to vector<1x1x4x128xf32>
      tpu.vector_store %arg5[%c0_48, %c0_49, %c0_50, %c0_51], %76 {strides = array<i32>} : memref<1x1x4x128xf32, #tpu.memory_space<vmem>>, vector<1x1x4x128xf32>,
    } else {
    }
    %c0 = arith.constant 0 : index
    %c0_1 = arith.constant 0 : index
    %c0_2 = arith.constant 0 : index
    %3 = vector.load %arg4[%c0, %c0_1, %c0_2] : memref<1x8x128xi32, #tpu.memory_space<vmem>>, vector<1x8x128xi32>
    %4 = vector.shape_cast %3 : vector<1x8x128xi32> to vector<8x128xi32>
    %c0_i32_3 = arith.constant 0 : i32
    %5 = vector.broadcast %c0_i32_3 : i32 to vector<8x128xi32>
    %6 = arith.cmpi sge, %4, %5 : vector<8x128xi32>
    %7 = arith.extui %6 : vector<8x128xi1> to vector<8x128xi32>
    %8 = arith.sitofp %7 : vector<8x128xi32> to vector<8x128xf32>
    %c0_4 = arith.constant 0 : index
    %c0_5 = arith.constant 0 : index
    %c0_6 = arith.constant 0 : index
    %c0_7 = arith.constant 0 : index
    %9 = vector.load %arg3[%c0_4, %c0_5, %c0_6, %c0_7] : memref<1x2x8x128xf32, #tpu.memory_space<vmem>>, vector<1x1x8x128xf32>
    %10 = vector.shape_cast %9 : vector<1x1x8x128xf32> to vector<8x128xf32>
    %c0_8 = arith.constant 0 : index
    %c1 = arith.constant 1 : index
    %c0_9 = arith.constant 0 : index
    %c0_10 = arith.constant 0 : index
    %11 = vector.load %arg3[%c0_8, %c1, %c0_9, %c0_10] : memref<1x2x8x128xf32, #tpu.memory_space<vmem>>, vector<1x1x8x128xf32>
    %12 = vector.shape_cast %11 : vector<1x1x8x128xf32> to vector<8x128xf32>
    %13 = arith.maximumf %10, %12 : vector<8x128xf32>
    %14 = arith.subf %10, %13 : vector<8x128xf32>
    %15 = math.exp %14 : vector<8x128xf32>
    %16 = arith.subf %12, %13 : vector<8x128xf32>
    %17 = math.exp %16 : vector<8x128xf32>
    %18 = arith.addf %15, %17 : vector<8x128xf32>
    %19 = tpu.reciprocal %18 : vector<8x128xf32> -> vector<8x128xf32>
    %20 = arith.mulf %19, %8 : vector<8x128xf32>
    %21 = arith.mulf %15, %20 : vector<8x128xf32>
    %c0_i32_11 = arith.constant 0 : i32
    %22 = vector.broadcast %c0_i32_11 : i32 to vector<8x128xi32>
    %23 = arith.cmpi eq, %4, %22 : vector<8x128xi32>
    %24 = arith.extui %23 : vector<8x128xi1> to vector<8x128xi32>
    %25 = arith.sitofp %24 : vector<8x128xi32> to vector<8x128xf32>
    %26 = arith.mulf %21, %25 : vector<8x128xf32>
    %cst = arith.constant dense<0.000000e+00> : vector<128xf32>
    %27 = vector.multi_reduction <add>, %26, %cst [0] : vector<8x128xf32> to vector<128xf32>
    %28 = vector.shape_cast %27 : vector<128xf32> to vector<1x128xf32>
    %cst_12 = arith.constant dense<0.000000e+00> : vector<128xf32>
    %29 = vector.multi_reduction <add>, %21, %cst_12 [0] : vector<8x128xf32> to vector<128xf32>
    %30 = vector.shape_cast %29 : vector<128xf32> to vector<1x128xf32>
    %cst_13 = arith.constant dense<0.000000e+00> : vector<128xf32>
    %31 = vector.multi_reduction <add>, %25, %cst_13 [0] : vector<8x128xf32> to vector<128xf32>
    %32 = vector.shape_cast %31 : vector<128xf32> to vector<1x128xf32>
    %c0_14 = arith.constant 0 : index
    %c0_15 = arith.constant 0 : index
    %c0_16 = arith.constant 0 : index
    %c0_17 = arith.constant 0 : index
    %33 = vector.load %arg5[%c0_14, %c0_15, %c0_16, %c0_17] : memref<1x1x4x128xf32, #tpu.memory_space<vmem>>, vector<1x1x1x128xf32>
    %34 = vector.shape_cast %33 : vector<1x1x1x128xf32> to vector<1x128xf32>
    %35 = arith.addf %34, %28 : vector<1x128xf32>
    %c0_18 = arith.constant 0 : index
    %c0_19 = arith.constant 0 : index
    %c0_20 = arith.constant 0 : index
    %c0_21 = arith.constant 0 : index
    %36 = vector.load %arg5[%c0_18, %c0_19, %c0_20, %c0_21] : memref<1x1x4x128xf32, #tpu.memory_space<vmem>>, vector<1x1x1x128xf32>
    %37 = vector.shape_cast %36 : vector<1x1x1x128xf32> to vector<1x128xf32>
    %38 = vector.shape_cast %35 : vector<1x128xf32> to vector<1x1x1x128xf32>
    tpu.vector_store %arg5[%c0_18, %c0_19, %c0_20, %c0_21], %38 {strides = array<i32>} : memref<1x1x4x128xf32, #tpu.memory_space<vmem>>, vector<1x1x1x128xf32>,
    %c0_22 = arith.constant 0 : index
    %c0_23 = arith.constant 0 : index
    %c2 = arith.constant 2 : index
    %c0_24 = arith.constant 0 : index
    %39 = vector.load %arg5[%c0_22, %c0_23, %c2, %c0_24] : memref<1x1x4x128xf32, #tpu.memory_space<vmem>>, vector<1x1x1x128xf32>
    %40 = vector.shape_cast %39 : vector<1x1x1x128xf32> to vector<1x128xf32>
    %41 = arith.addf %30, %32 : vector<1x128xf32>
    %42 = arith.subf %41, %28 : vector<1x128xf32>
    %43 = arith.addf %40, %42 : vector<1x128xf32>
    %c0_25 = arith.constant 0 : index
    %c0_26 = arith.constant 0 : index
    %c2_27 = arith.constant 2 : index
    %c0_28 = arith.constant 0 : index
    %44 = vector.load %arg5[%c0_25, %c0_26, %c2_27, %c0_28] : memref<1x1x4x128xf32, #tpu.memory_space<vmem>>, vector<1x1x1x128xf32>
    %45 = vector.shape_cast %44 : vector<1x1x1x128xf32> to vector<1x128xf32>
    %46 = vector.shape_cast %43 : vector<1x128xf32> to vector<1x1x1x128xf32>
    tpu.vector_store %arg5[%c0_25, %c0_26, %c2_27, %c0_28], %46 {strides = array<i32>} : memref<1x1x4x128xf32, #tpu.memory_space<vmem>>, vector<1x1x1x128xf32>,
    %47 = arith.mulf %17, %20 : vector<8x128xf32>
    %c1_i32 = arith.constant 1 : i32
    %48 = vector.broadcast %c1_i32 : i32 to vector<8x128xi32>
    %49 = arith.cmpi eq, %4, %48 : vector<8x128xi32>
    %50 = arith.extui %49 : vector<8x128xi1> to vector<8x128xi32>
    %51 = arith.sitofp %50 : vector<8x128xi32> to vector<8x128xf32>
    %52 = arith.mulf %47, %51 : vector<8x128xf32>
    %cst_29 = arith.constant dense<0.000000e+00> : vector<128xf32>
    %53 = vector.multi_reduction <add>, %52, %cst_29 [0] : vector<8x128xf32> to vector<128xf32>
    %54 = vector.shape_cast %53 : vector<128xf32> to vector<1x128xf32>
    %cst_30 = arith.constant dense<0.000000e+00> : vector<128xf32>
    %55 = vector.multi_reduction <add>, %47, %cst_30 [0] : vector<8x128xf32> to vector<128xf32>
    %56 = vector.shape_cast %55 : vector<128xf32> to vector<1x128xf32>
    %cst_31 = arith.constant dense<0.000000e+00> : vector<128xf32>
    %57 = vector.multi_reduction <add>, %51, %cst_31 [0] : vector<8x128xf32> to vector<128xf32>
    %58 = vector.shape_cast %57 : vector<128xf32> to vector<1x128xf32>
    %c0_32 = arith.constant 0 : index
    %c0_33 = arith.constant 0 : index
    %c1_34 = arith.constant 1 : index
    %c0_35 = arith.constant 0 : index
    %59 = vector.load %arg5[%c0_32, %c0_33, %c1_34, %c0_35] : memref<1x1x4x128xf32, #tpu.memory_space<vmem>>, vector<1x1x1x128xf32>
    %60 = vector.shape_cast %59 : vector<1x1x1x128xf32> to vector<1x128xf32>
    %61 = arith.addf %60, %54 : vector<1x128xf32>
    %c0_36 = arith.constant 0 : index
    %c0_37 = arith.constant 0 : index
    %c1_38 = arith.constant 1 : index
    %c0_39 = arith.constant 0 : index
    %62 = vector.load %arg5[%c0_36, %c0_37, %c1_38, %c0_39] : memref<1x1x4x128xf32, #tpu.memory_space<vmem>>, vector<1x1x1x128xf32>
    %63 = vector.shape_cast %62 : vector<1x1x1x128xf32> to vector<1x128xf32>
    %64 = vector.shape_cast %61 : vector<1x128xf32> to vector<1x1x1x128xf32>
    tpu.vector_store %arg5[%c0_36, %c0_37, %c1_38, %c0_39], %64 {strides = array<i32>} : memref<1x1x4x128xf32, #tpu.memory_space<vmem>>, vector<1x1x1x128xf32>,
    %c0_40 = arith.constant 0 : index
    %c0_41 = arith.constant 0 : index
    %c3 = arith.constant 3 : index
    %c0_42 = arith.constant 0 : index
    %65 = vector.load %arg5[%c0_40, %c0_41, %c3, %c0_42] : memref<1x1x4x128xf32, #tpu.memory_space<vmem>>, vector<1x1x1x128xf32>
    %66 = vector.shape_cast %65 : vector<1x1x1x128xf32> to vector<1x128xf32>
    %67 = arith.addf %56, %58 : vector<1x128xf32>
    %68 = arith.subf %67, %54 : vector<1x128xf32>
    %69 = arith.addf %66, %68 : vector<1x128xf32>
    %c0_43 = arith.constant 0 : index
    %c0_44 = arith.constant 0 : index
    %c3_45 = arith.constant 3 : index
    %c0_46 = arith.constant 0 : index
    %70 = vector.load %arg5[%c0_43, %c0_44, %c3_45, %c0_46] : memref<1x1x4x128xf32, #tpu.memory_space<vmem>>, vector<1x1x1x128xf32>
    %71 = vector.shape_cast %70 : vector<1x1x1x128xf32> to vector<1x128xf32>
    %72 = vector.shape_cast %69 : vector<1x128xf32> to vector<1x1x1x128xf32>
    tpu.vector_store %arg5[%c0_43, %c0_44, %c3_45, %c0_46], %72 {strides = array<i32>} : memref<1x1x4x128xf32, #tpu.memory_space<vmem>>, vector<1x1x1x128xf32>,
    return
  }
  func.func @transform_0(%arg0: i32, %arg1: i32, %arg2: i32) -> (i32, i32, i32, i32) {
    %c1_i32 = arith.constant 1 : i32
    %0 = arith.muli %arg1, %c1_i32 : i32
    %1 = arith.addi %0, %arg2 : i32
    %c0_i32 = arith.constant 0 : i32
    %c0_i32_0 = arith.constant 0 : i32
    %c0_i32_1 = arith.constant 0 : i32
    return %arg0, %c0_i32, %1, %c0_i32_0 : i32, i32, i32, i32
  }
  func.func @transform_1(%arg0: i32, %arg1: i32, %arg2: i32) -> (i32, i32, i32) {
    %c1_i32 = arith.constant 1 : i32
    %0 = arith.muli %arg1, %c1_i32 : i32
    %1 = arith.addi %0, %arg2 : i32
    %c0_i32 = arith.constant 0 : i32
    %c0_i32_0 = arith.constant 0 : i32
    return %arg0, %1, %c0_i32 : i32, i32, i32
  }
  func.func @transform_2(%arg0: i32, %arg1: i32, %arg2: i32) -> (i32, i32, i32, i32) {
    %c0_i32 = arith.constant 0 : i32
    %c0_i32_0 = arith.constant 0 : i32
    %c0_i32_1 = arith.constant 0 : i32
    return %arg0, %arg1, %c0_i32, %c0_i32_0 : i32, i32, i32, i32
  }
}

</mosaic_0001>

<bundles_post_ra>
// kernel: tpu_custom_call.1
= control target key start
LH: loop header
LB: loop body
LE: loop exit
PB: predicated region body
PF: predicated region fallthrough
CT: control target
= control target key end

     0   :  { %7 = vsyncpa [#allocation3], 0  ;;  %s938_s0 = inlined_call_operand.hbm [shape: f32[2,2,8,128], index: 0, kind: input, shape index: {}]   ;;  %s939_s1 = inlined_call_operand.hbm [shape: s32[2,8,128], index: 1, kind: input, shape index: {}]   ;;  %s940_s2 = inlined_call_operand.hbm [shape: f32[2,1,4,128], index: 2, kind: output, shape index: {}]  }
   0x1   :  { %9 = vsyncpa [#allocation3 + $0x1], 0 }
   0x2   :  { %10 = vsyncpa [#allocation6], 0 }
   0x3   :  { %12 = vsyncpa [#allocation6 + $0x1], 0 }
   0x4   :  { %13 = vsyncpa [#allocation4], 0 }
   0x5   :  { %15 = vsyncpa [#allocation4 + $0x1], 0  ;;  %s710_s9 = smov 0   ;;  %s712_s10 = smov 0  }
   0x6   :  { %s714_s11 = smov 0   ;;  %s716_s12 = smov 0  }
   0x7   :  { %s718_s13 = smov 0   ;;  %s720_s14 = smov 0  }
   0x8 LB: > { %s443_s15 = sadd.s32 4294967295, %s687_s14   ;;  %s444_s16 = sadd.s32 4294967294, %s687_s14   ;;  %s687_s14 = sphi %s720_s14, %s21_s14   ;;  %s683_s13 = sphi %s718_s13, %s959_s13   ;;  %s679_s12 = sphi %s716_s12, %s958_s12   ;;  %s675_s11 = sphi %s714_s11, %s957_s11   ;;  %s671_s10 = sphi %s712_s10, %s956_s10   ;;  %s667_s9 = sphi %s710_s9, %s955_s9  }
   0x9   : > { %s40_s17 = sadd.s32 1, %s683_s13  ;;  %s51_s18 = sadd.s32 1, %s675_s11 }
   0xa   : > { %p42_p0 = scmp.ge.s32.totalorder %s40_s17, 2  ;;  %p58_p1 = scmp.ne.s32.totalorder %s675_s11, %s671_s10 }
   0xb   : > { %p59_p2 = scmp.eq.s32.totalorder %s687_s14, 0  ;;  %p64_p3 = scmp.ne.s32.totalorder %s671_s10, %s667_s9 }
   0xc   : > { %s961_s17 = smov (%p42_p0, %s40_s17), 0  ;;  %p65_p5 = scmp.eq.s32.totalorder %s443_s15, 0 }
   0xd   : > { %p751_p4 = por %p59_p2, %p58_p1  ;;  %s46_s20 = ssub.s32 %s683_s13, %s961_s17 }
   0xe   : > { %p120_p6 = scmp.eq.s32.totalorder %s443_s15, 1  ;;  %p49_p7 = scmp.eq.s32.totalorder %s46_s20, 0 }
   0xf   : > { %p757_p8 = por %p65_p5, %p64_p3  ;;  %p126_p10 = scmp.eq.s32.totalorder %s444_s16, 1 }
  0x10   : > { %p761_p9 = por %p120_p6, %p58_p1  ;;  %p482_p13 = scmp.lt.s32.totalorder %s687_s14, 2 }
  0x11   : > { %s944_s21 = scalar_select %p757_p8, 1, 0 }
  0x12   : > { %s945_s22 = scalar_select %p761_p9, 1, 0 }
  0x13   : > { %s766_s23 = scalar_select %p49_p7, %s675_s11, %s51_s18  }
  0x14   : > { %p768_p11 = por %p126_p10, %p64_p3  ;;  %s775_s25 = sand.u32 1, %s675_s11  }
  0x15   : > { %s447_s26 = sshll.u32 %s775_s25, 4  ;;  %s464_s27 = sshll.u32 %s683_s13, 8 }
  0x16   : > { %s946_s24 = scalar_select %p768_p11, 1, 0 }
  0x17   : > { %s782_s30 = scalar_lea.hbm %s938_s0, %s464_s27  ;;  %s150_s3 = scalar_lea.vmem [#allocation2], %s447_s26 }
  0x18   : > { %s159_s4 = sshll.u32 %s150_s3, 4  ;;  %p788_p0 = pnand %p482_p13, %p751_p4  ;;  %s784_s4 = int_to_ptr.vmem [resolvable:$true] %s159_s4 }
  0x19   : > { %s147_s6 = scalar_lea.sflag [#allocation3], %s775_s25  ;;  %s541_s7 = scalar_lea.hbm %s782_s30, 256 }
  0x1a   : > { %p542_p2 = scmp.ne.s32.totalorder %s782_s30, %s541_s7  ;;  %p543_p3 = pneg %p788_p0 }
  0x1b   : > { %s546_s16 = scalar_lea.hbm %s938_s0, 512  ;;  %p547_p4 = scmp.lt.u32.totalorder %s782_s30, %s938_s0 }
  0x1c   : > { %p544_p5 = pnand %p543_p3, %p542_p2  ;;  %p548_p7 = scmp.lt.u32.totalorder %s546_s16, %s541_s7 }
  0x1d   : > { %p550_p13 = scmp.lt.u32.totalorder %s541_s7, %s782_s30 }
  0x1e   : > { %p545_p6 = pneg %p544_p5  ;;  %p549_p10 = por %p548_p7, %p547_p4 }
  0x20   : > { %p551_p12 = por %p550_p13, %p549_p10 }
  0x22   : > { %p552_p1 = pnand %p551_p12, %p545_p6 }
  0x24   : > { %555 = shalt.err (!%p552_p1)
}
  0x25   : > { %s556_s20 = scalar_lea.vmem %s784_s4, 256  ;;  %s689_s26 = smov [#allocation2]  }
  0x26   : > { %p557_p2 = scmp.ne.s32.totalorder %s784_s4, %s556_s20  ;;  %s561_s27 = sshll.u32 %s689_s26, 4  ;;  %s562_s27 = int_to_ptr.vmem [resolvable:$false] %s561_s27 }
  0x27   : > { %s563_s28 = scalar_lea.vmem %s562_s27, 512  ;;  %p564_p9 = scmp.lt.s32.totalorder %s784_s4, %s562_s27 }
  0x28   : > { %p559_p5 = pnand %p557_p2, %p543_p3  ;;  %p565_p4 = scmp.lt.s32.totalorder %s563_s28, %s556_s20 }
  0x2a   : > { %p560_p11 = pneg %p559_p5  ;;  %p566_p7 = por %p565_p4, %p564_p9 }
  0x2c   : > { %p567_p10 = pnand %p566_p7, %p560_p11 }
  0x2e   : > { %570 = shalt.err (!%p567_p10)
}
  0x2f   : > { %s690_s29 = smov 128   ;;  %s691_s3 = smov 8  }
  0x30   : > { %474 = dma.hbm_to_vmem [thread:$0]  (!%p788_p0), %s782_s30, 256, %s784_s4, %s147_s6, %s690_s29, %s690_s29, %s691_s3  }
  0x31   : > { %p187_p12 = scmp.lt.s32.totalorder %s687_s14, 3  ;;  %s450_s7 = sshll.u32 %s775_s25, 3 }
  0x32   : > { %s451_s8 = sshll.u32 %s683_s13, 7  ;;  %p948_p9 = scmp.ge.s32.totalorder %s687_s14, 1 }
  0x33   : > { %s833_s19 = scalar_lea.hbm %s939_s1, %s451_s8  ;;  %s173_s20 = scalar_lea.vmem [#allocation5], %s450_s7 }
  0x34   : > { %p826_p11 = pnand %p948_p9, %p187_p12  ;;  %s182_s26 = sshll.u32 %s173_s20, 4  ;;  %s183_s26 = int_to_ptr.vmem [resolvable:$true] %s182_s26 }
  0x35   : > { %s170_s30 = scalar_lea.sflag [#allocation6], %s775_s25  ;;  %s571_s4 = scalar_lea.hbm %s833_s19, 128 }
  0x36   : > { %s949_s15 = scalar_select %p826_p11, 1, 0 }
  0x37   : > { %p572_p1 = scmp.ne.s32.totalorder %s833_s19, %s571_s4  ;;  %s576_s28 = scalar_lea.hbm %s939_s1, 256 }
  0x38   : > { %p577_p2 = scmp.lt.u32.totalorder %s833_s19, %s939_s1  ;;  %p578_p5 = scmp.lt.u32.totalorder %s576_s28, %s571_s4 }
  0x39   : > { %p574_p6 = pnand %p572_p1, %p543_p3  ;;  %p580_p7 = scmp.lt.u32.totalorder %s571_s4, %s833_s19 }
  0x3a   : > { %p579_p4 = por %p578_p5, %p577_p2 }
  0x3b   : > { %p575_p13 = pneg %p574_p6 }
  0x3c   : > { %p581_p10 = por %p580_p7, %p579_p4 }
  0x3e   : > { %p582_p12 = pnand %p581_p10, %p575_p13 }
  0x40   : > { %585 = shalt.err (!%p582_p12)
}
  0x41   : > { %s586_s25 = scalar_lea.vmem %s183_s26, 128  ;;  %s692_s7 = smov [#allocation5]  }
  0x42   : > { %p587_p9 = scmp.ne.s32.totalorder %s183_s26, %s586_s25  ;;  %s591_s8 = sshll.u32 %s692_s7, 4  ;;  %s592_s8 = int_to_ptr.vmem [resolvable:$false] %s591_s8 }
  0x43   : > { %s593_s16 = scalar_lea.vmem %s592_s8, 256  ;;  %p594_p8 = scmp.lt.s32.totalorder %s183_s26, %s592_s8 }
  0x44   : > { %p589_p1 = pnand %p587_p9, %p543_p3  ;;  %p595_p11 = scmp.lt.s32.totalorder %s593_s16, %s586_s25 }
  0x46   : > { %p590_p6 = pneg %p589_p1  ;;  %p596_p2 = por %p595_p11, %p594_p8 }
  0x48   : > { %p597_p5 = pnand %p596_p2, %p590_p6 }
  0x4a   : > { %600 = shalt.err (!%p597_p5)
}
  0x4b   : > { %477 = dma.hbm_to_vmem [thread:$0]  (!%p788_p0), %s833_s19, 128, %s183_s26, %s170_s30  }
  0x4c   : > { %p950_p13 = scmp.ne.s32.totalorder %s949_s15, 0 }
  0x4d   : > { %s858_s18 = sand.u32 (!%p950_p13), 1, %s671_s10   ;;  %p951_p3 = scmp.ne.s32.totalorder (!%p950_p13), %s944_s21, 0 }
  0x4e   : > { %191 = sbr.rel (%p950_p13) target bundleno = 157 (0x9d), region = 28  ;;  %s453_s20 = sshll.u32 (!%p950_p13), %s858_s18, 4 }
  0x4f   : > { %s194_s4 = scalar_lea.sflag (!%p950_p13), [#allocation3], %s858_s18  ;;  %s197_s6 = scalar_lea.vmem (!%p950_p13), [#allocation2], %s453_s20 }
  0x55   : > { %654 = dma.done.wait (%p951_p3), %s194_s4, 256  }
  0x56   : > { %656 = vsyncadd (%p951_p3), %s194_s4, 4294967040  ;;  %s454_s5 = sshll.u32 %s858_s18, 3  ;;  %s203_s15 = scalar_lea.sflag [#allocation6], %s858_s18 }
  0x57   : > { %s206_s19 = scalar_lea.vmem [#allocation5], %s454_s5 }
  0x58   : > { %658 = dma.done.wait (%p951_p3), %s203_s15, 128  }
  0x59   : > { %660 = vsyncadd (%p951_p3), %s203_s15, 4294967168  ;;  %s455_s26 = sshll.u32 %s858_s18, 2  ;;  %v693_v0 = vmov 0.0   ;;  %v243_v1 = vld [vmem:[%s197_s6] sm:$0xff]  ;;  %v457_v2 = vld [vmem:[%s197_s6 + $0x8] sm:$0xff]  ;;  %s461_s21 = sshll.u32 %s679_s12, 6 }
  0x5a   : > { %s873_s30 = scalar_lea.vmem [#allocation7], %s455_s26  ;;  %v246_v3 = vmax.f32 %v243_v1, %v457_v2  ;;  %v239_v8 = vld [vmem:[%s206_s19] sm:$0xff]  ;;  %s887_s3 = scalar_lea.hbm %s940_s2, %s461_s21 }
  0x5b   : > { %238 = vst [vmem:[%s873_s30] sm:$0xf] %v693_v0  ;;  %vm257_vm0 = vcmp.eq.s32.totalorder %v239_v8, 0  ;;  %vm288_vm1 = vcmp.eq.s32.totalorder %v239_v8, 1  ;;  %vm240_vm2 = vcmp.ge.s32.totalorder %v239_v8, 0  ;;  %s333_s27 = sshll.u32 %s873_s30, 4  ;;  %s319_s12 = scalar_lea.sflag [#allocation4], %s858_s18  ;;  %s889_s27 = int_to_ptr.vmem [resolvable:$true] %s333_s27 }
  0x5c   : > { %v247_v4 = vsub.f32 %v243_v1, %v246_v3  ;;  %v250_v5 = vsub.f32 %v457_v2, %v246_v3  ;;  %v458_v12 = vsel %vm257_vm0, 1.0, %v693_v0  ;;  %v459_v13 = vsel %vm288_vm1, 1.0, %v693_v0  ;;  %s601_s25 = scalar_lea.vmem %s889_s27, 64  ;;  %p952_p0 = scmp.ne.s32.totalorder %s945_s22, 0 }
  0x5d   : > { %v273_v14 = vrot.slane %v458_v12, 4  ;;  %v304_v15 = vrot.slane %v459_v13, 4  ;;  %v456_v18 = vsel %vm240_vm2, 1.0, %v693_v0  ;;  %p602_p8 = scmp.ne.s32.totalorder %s889_s27, %s601_s25  ;;  %s694_s7 = smov [#allocation7]  }
  0x5e   : > { %v248_v6 = vmul.f32 1.442695, %v247_v4  ;;  %v251_v7 = vmul.f32 1.442695, %v250_v5  ;;  %s605_s8 = sshll.u32 %s694_s7, 4  ;;  %s606_s8 = int_to_ptr.vmem [resolvable:$false] %s605_s8 }
  0x5f   : > { %v274_v16 = vadd.f32 %v458_v12, %v273_v14  ;;  %v305_v17 = vadd.f32 %v459_v13, %v304_v15  ;;  %p603_p11 = pnand %p602_p8, %p952_p0  ;;  %s607_s16 = scalar_lea.vmem %s606_s8, 128 }
  0x60   : > { %535 = vpow2.f32 %v248_v6  ;;  %p608_p7 = scmp.lt.s32.totalorder %s889_s27, %s606_s8  ;;  %p609_p10 = scmp.lt.s32.totalorder %s607_s16, %s601_s25 }
  0x61   : > { %537 = vpow2.f32 %v251_v7  ;;  %v275_v20 = vrot.slane %v274_v16, 2  ;;  %v306_v21 = vrot.slane %v305_v17, 2  ;;  %p604_p4 = pneg %p603_p11 }
  0x62   : > { %v279_v55 = vld [vmem:[%s873_s30] sm:$0x1]  ;;  %v310_v56 = vld [vmem:[%s873_s30 + $0x1] sm:$0x1]  ;;  %v282_v61 = vld [vmem:[%s873_s30 + $0x2] sm:$0x1]  ;;  %p610_p12 = por %p609_p10, %p608_p7 }
  0x63   : > { %v276_v25 = vadd.f32 %v275_v20, %v274_v16  ;;  %v307_v26 = vadd.f32 %v306_v21, %v305_v17  ;;  %v313_v62 = vld [vmem:[%s873_s30 + $0x3] sm:$0x1] }
  0x64   : > { %p611_p9 = pnand %p610_p12, %p604_p4 }
  0x65   : > { %v277_v35 = vrot.slane %v276_v25, 1  ;;  %v308_v36 = vrot.slane %v307_v26, 1 }
  0x67   : > { %v278_v45 = vadd.f32 %v277_v35, %v276_v25  ;;  %v309_v46 = vadd.f32 %v308_v36, %v307_v26 }
  0x6a   : > { %v536_v9 = vpop.eup %535 }
  0x6b   : > { %v538_v10 = vpop.eup %537 }
  0x6c   : > { %v253_v11 = vadd.f32 %v538_v10, %v536_v9 }
  0x6e   : > { %539 = vrcp.f32 %v253_v11 }
  0x78   : > { %v540_v19 = vpop.eup %539 }
  0x79   : > { %v255_v22 = vmul.f32 %v540_v19, %v456_v18 }
  0x7b   : > { %v256_v23 = vmul.f32 %v536_v9, %v255_v22  ;;  %v287_v24 = vmul.f32 %v538_v10, %v255_v22 }
  0x7d   : > { %v260_v27 = vmul.f32 %v458_v12, %v256_v23  ;;  %v267_v28 = vrot.slane %v256_v23, 4  ;;  %v291_v29 = vmul.f32 %v459_v13, %v287_v24  ;;  %v298_v30 = vrot.slane %v287_v24, 4 }
  0x7f   : > { %v261_v31 = vrot.slane %v260_v27, 4  ;;  %v268_v32 = vadd.f32 %v267_v28, %v256_v23  ;;  %v292_v33 = vrot.slane %v291_v29, 4  ;;  %v299_v34 = vadd.f32 %v298_v30, %v287_v24 }
  0x81   : > { %v262_v37 = vadd.f32 %v261_v31, %v260_v27  ;;  %v293_v38 = vadd.f32 %v292_v33, %v291_v29  ;;  %v269_v39 = vrot.slane %v268_v32, 2  ;;  %v300_v40 = vrot.slane %v299_v34, 2 }
  0x83   : > { %v263_v41 = vrot.slane %v262_v37, 2  ;;  %v270_v42 = vadd.f32 %v269_v39, %v268_v32  ;;  %v294_v43 = vrot.slane %v293_v38, 2  ;;  %v301_v44 = vadd.f32 %v300_v40, %v299_v34 }
  0x85   : > { %v264_v47 = vadd.f32 %v263_v41, %v262_v37  ;;  %v271_v48 = vrot.slane %v270_v42, 1  ;;  %v295_v49 = vadd.f32 %v294_v43, %v293_v38  ;;  %v302_v50 = vrot.slane %v301_v44, 1 }
  0x87   : > { %v265_v51 = vrot.slane %v264_v47, 1  ;;  %v272_v52 = vadd.f32 %v271_v48, %v270_v42  ;;  %v296_v53 = vrot.slane %v295_v49, 1  ;;  %v303_v54 = vadd.f32 %v302_v50, %v301_v44 }
  0x89   : > { %v266_v57 = vadd.f32 %v265_v51, %v264_v47  ;;  %v283_v58 = vadd.f32 %v278_v45, %v272_v52  ;;  %v297_v59 = vadd.f32 %v296_v53, %v295_v49  ;;  %v314_v60 = vadd.f32 %v309_v46, %v303_v54 }
  0x8b   : > { %v280_v63 = vadd.f32 %v279_v55, %v266_v57  ;;  %v284_v0 = vsub.f32 %v283_v58, %v266_v57  ;;  %v311_v1 = vadd.f32 %v310_v56, %v297_v59  ;;  %v315_v2 = vsub.f32 %v314_v60, %v297_v59 }
  0x8d   : > { %281 = vst [vmem:[%s873_s30] sm:$0x1] %v280_v63  ;;  %v285_v3 = vadd.f32 %v284_v0, %v282_v61  ;;  %312 = vst [vmem:[%s873_s30 + $0x1] sm:$0x1] %v311_v1  ;;  %v316_v4 = vadd.f32 %v315_v2, %v313_v62 }
  0x8f   : > { %286 = vst [vmem:[%s873_s30 + $0x2] sm:$0x1] %v285_v3  ;;  %317 = vst [vmem:[%s873_s30 + $0x3] sm:$0x1] %v316_v4 }
  0x90   : > { %614 = shalt.err (!%p611_p9)
}
  0x91   : > { %s615_s18 = scalar_lea.hbm %s887_s3, 64  ;;  %s619_s6 = scalar_lea.hbm %s940_s2, 128 }
  0x92   : > { %p616_p1 = scmp.ne.s32.totalorder %s887_s3, %s615_s18  ;;  %p620_p5 = scmp.lt.u32.totalorder %s887_s3, %s940_s2 }
  0x93   : > { %p621_p13 = scmp.lt.u32.totalorder %s619_s6, %s615_s18  ;;  %p623_p8 = scmp.lt.u32.totalorder %s615_s18, %s887_s3 }
  0x94   : > { %p617_p6 = pnand %p616_p1, %p952_p0 }
  0x95   : > { %p622_p3 = por %p621_p13, %p620_p5 }
  0x96   : > { %p618_p2 = pneg %p617_p6 }
  0x97   : > { %p624_p11 = por %p623_p8, %p622_p3 }
  0x99   : > { %p625_p4 = pnand %p624_p11, %p618_p2 }
  0x9b   : > { %628 = shalt.err (!%p625_p4)
}
  0x9c   : > { %469 = dma.vmem_to_hbm [thread:$0]  (%p952_p0), %s889_s27, 64, %s887_s3, %s319_s12  }
  0x9d PF: > { %s345_s19 = sand.u32 1, %s667_s9   ;;  %p953_p7 = scmp.ne.s32.totalorder %s946_s24, 0 }
  0x9e   : > { %p954_p10 = scmp.ge.s32.totalorder %s687_s14, 2  ;;  %s346_s26 = scalar_lea.sflag [#allocation4], %s345_s19 }
  0xa0   : > { %p479_p12 = pnand %p954_p10, %p953_p7 }
  0xa2   : > { %662 = dma.done.wait (!%p479_p12), %s346_s26, 64  }
  0xa3   : > { %664 = vsyncadd (!%p479_p12), %s346_s26, 4294967232  ;;  %s21_s14 = sadd.s32 1, %s687_s14   ;;  %s955_s9 = smov %s671_s10 }
  0xa4   : > { %p18_p9 = scmp.ge.s32.totalorder %s21_s14, 4   ;;  %s956_s10 = smov %s675_s11 }
  0xa5   : > { %s957_s11 = smov %s766_s23  ;;  %s958_s12 = smov %s683_s13 }
  0xa6   : > { %s959_s13 = smov %s961_s17  ;;  %20 = sbr.rel (!%p18_p9) target bundleno = 8 (0x8), region = 91 }
  0xad   :  { %351 = vsyncpa [#allocation3], 1 }
  0xae   :  { %353 = vsyncpa [#allocation3 + $0x1], 1 }
  0xaf   :  { %354 = vsyncpa [#allocation6], 1 }
  0xb0   :  { %356 = vsyncpa [#allocation6 + $0x1], 1 }
  0xb1   :  { %357 = vsyncpa [#allocation4], 1 }
  0xb2   :  { %359 = vsyncpa [#allocation4 + $0x1], 1 }

</bundles_post_ra>
